<compile_context>
chip_gen: v7x
topology: tpu7x:2x2x1
jax: 0.10.0
libtpu: 0.0.40
codegen_flags: <defaults>
</compile_context>

<pallas_src>
import jax
import jax.numpy as jnp
from jax.experimental import pallas as pl
from jax.experimental.pallas import tpu as pltpu

_MiB = 1024 * 1024
_LANE = 128


def _sublane_multiple(dtype) -> int:
    # Sub-32-bit dtypes pack along sublanes: 8 rows for 4-byte, 16 for 2-byte,
    # 32 for 1-byte elements.
    itemsize = jnp.dtype(dtype).itemsize
    return {4: 8, 2: 16, 1: 32}.get(itemsize, 8)


def _round_up(n, m):
    return ((n + m - 1) // m) * m


def _choose_2d_shape(x):
    """Pick a lane-dense (rows, cols) view of x.

    Reshape of a contiguous array is free (metadata-only) in XLA, so prefer a
    wide last dim that is a multiple of 128; fall back to the original last
    dim if no 128-multiple divides the element count.
    """
    total = int(x.size)
    for lane_width in (2048, 1024, 512, 256, 128):
        if total >= lane_width and total % lane_width == 0:
            return total // lane_width, lane_width
    if x.ndim >= 2:
        return total // x.shape[-1], x.shape[-1]
    return 1, total


def _tpu_vmem_and_cores():
    """Best-effort hardware query; conservative defaults if unavailable."""
    try:
        info = pltpu.get_tpu_info()
    except Exception:
        info = None
    vmem = None
    cores = None
    if info is not None:
        vmem = getattr(info, "vmem_capacity_bytes", None)
        for name in ("num_cores", "num_tensorcores", "tensorcores_per_chip"):
            cores = getattr(info, name, None)
            if cores:
                break
    vmem = int(vmem) if vmem else 64 * _MiB   # conservative = v7x per-TC VMEM
    cores = int(cores) if cores else 1
    return vmem, cores


def _make_loss_kernel(rows, tile_rows, steps_per_part, n_row_tiles, ragged,
                      has_padded_steps):
    def kernel(x_ref, loss_ref, acc_ref):
        p = pl.program_id(0)
        s = pl.program_id(1)

        # Zero the resident per-partition accumulator at the start of each
        # partition's reduction sweep.
        @pl.when(s == 0)
        def _():
            acc_ref[...] = jnp.zeros_like(acc_ref)

        t = p * steps_per_part + s  # logical (unclamped) tile index

        def accumulate_full():
            acc_ref[...] += jnp.sum(x_ref[...].astype(jnp.float32), axis=0,
                                    keepdims=True)

        if ragged:
            # Steady-state tiles: unmasked per-lane accumulate (VPU only).
            @pl.when(t < n_row_tiles - 1)
            def _():
                accumulate_full()

            # Single ragged last tile: mask rows past the end of the array.
            # Fully padded steps (t >= n_row_tiles) fall through and do no work.
            @pl.when(t == n_row_tiles - 1)
            def _():
                x = x_ref[...].astype(jnp.float32)
                row_ids = (n_row_tiles - 1) * tile_rows + jax.lax.broadcasted_iota(
                    jnp.int32, (x.shape[0], 1), 0)
                x = jnp.where(row_ids < rows, x, 0.0)
                acc_ref[...] += jnp.sum(x, axis=0, keepdims=True)
        elif has_padded_steps:
            @pl.when(t < n_row_tiles)
            def _():
                accumulate_full()
        else:
            accumulate_full()

        # Cross-lane reduce only on the final step of each partition.
        @pl.when(s == steps_per_part - 1)
        def _():
            loss_ref[...] = jnp.sum(acc_ref[...]).reshape(1, 1, 1)

    return kernel


def dummy_model_forward(x, *, block_bytes=None, num_partitions=None,
                        use_pallas=None, small_input_bytes=1 * _MiB):
    """Pallas version of DummyModel.forward.

    Returns (y, loss): y is x itself (identity, no kernel copy) and
    loss == x.sum() as a float32 scalar computed by a streaming reduction
    kernel (or a plain-XLA sum for tiny inputs).
    """
    y = x  # identity output path: no extra HBM traffic

    total = int(x.size)
    if use_pallas is None:
        use_pallas = x.nbytes >= small_input_bytes
    if total == 0 or not use_pallas:
        # Fast path: pallas_call setup would dominate for tiny inputs.
        return y, jnp.sum(x, dtype=jnp.float32)

    rows, cols = _choose_2d_shape(x)
    x2 = x.reshape(rows, cols)

    itemsize = jnp.dtype(x2.dtype).itemsize
    sub = _sublane_multiple(x2.dtype)
    padded_cols = _round_up(cols, _LANE)
    padded_bytes_per_row = padded_cols * itemsize  # true VMEM footprint / row

    vmem_capacity, num_cores = _tpu_vmem_and_cores()

    # Buffer depth: 2 on small-VMEM chips (v7x 64 MiB), 3 on 128 MiB chips.
    buffers = 2 if vmem_capacity <= 80 * _MiB else 3

    if block_bytes is None:
        block_bytes = 8 * _MiB  # amortizes ~0.35us/step overhead on all gens

    # Size the row tile from the PADDED footprint and keep all input buffers
    # within a conservative fraction of physical VMEM.
    input_budget = min(buffers * block_bytes, int(vmem_capacity * 0.7))
    tile_rows = max(input_budget // (buffers * padded_bytes_per_row), sub)
    tile_rows = max((tile_rows // sub) * sub, sub)
    if tile_rows >= rows:
        tile_rows = rows  # single full-extent block (no alignment requirement)
    n_row_tiles = pl.cdiv(rows, tile_rows)

    # Partition tiles across TensorCores only when it can help (v7x megacore
    # and enough tiles); serial single partition otherwise (v5e/v6e).
    if num_partitions is None:
        num_partitions = num_cores
    n_parts = num_partitions if (num_partitions > 1
                                 and n_row_tiles >= 2 * num_partitions) else 1
    steps = pl.cdiv(n_row_tiles, n_parts)
    has_padded_steps = n_parts * steps != n_row_tiles
    ragged = rows % tile_rows != 0

    def x_index_map(p, s):
        t = p * steps + s
        # Clamp so padded (p, s) steps read a valid block; their contribution
        # is skipped inside the kernel.
        return (jnp.minimum(t, n_row_tiles - 1), 0)

    total_steps = n_parts * steps
    in_spec_kwargs = {}
    if buffers >= 3 and total_steps >= buffers + 1:
        # Reduction-only kernel has little compute to hide DMA behind: deepen
        # the input prefetch when VMEM allows (v5e/v6e).
        in_spec_kwargs["pipeline_mode"] = pl.Buffered(buffers)

    # Scoped VMEM budget from padded footprints + headroom, below physical.
    padded_block_bytes = _round_up(min(tile_rows, rows), sub) * padded_bytes_per_row
    acc_bytes = 8 * padded_cols * 4  # accumulator padded to 8 sublanes
    vmem_limit = buffers * padded_block_bytes + acc_bytes + 4 * _MiB
    vmem_limit = max(vmem_limit, 32 * _MiB)
    vmem_limit = min(vmem_limit, vmem_capacity - 8 * _MiB)

    kernel = _make_loss_kernel(rows, tile_rows, steps, n_row_tiles, ragged,
                               has_padded_steps)

    cost = pl.CostEstimate(
        flops=total,
        transcendentals=0,
        bytes_accessed=int(total * itemsize + n_parts * 4),
    )

    partials = pl.pallas_call(
        kernel,
        out_shape=jax.ShapeDtypeStruct((n_parts, 1, 1), jnp.float32),
        grid=(n_parts, steps),
        in_specs=[pl.BlockSpec((tile_rows, cols), x_index_map, **in_spec_kwargs)],
        out_specs=pl.BlockSpec((1, 1, 1), lambda p, s: (p, 0, 0)),
        scratch_shapes=[pltpu.VMEM((1, cols), jnp.float32)],
        compiler_params=pltpu.CompilerParams(
            dimension_semantics=("parallel", "arbitrary"),
            vmem_limit_bytes=int(vmem_limit),
        ),
        cost_estimate=cost,
    )(x2)

    loss = jnp.sum(partials)
    return y, loss


if __name__ == "__main__":
    # Small 4-D activation batch, consistent with the dummy model's usage.
    x = jax.random.normal(jax.random.PRNGKey(0), (2, 4, 16, 16),
                          dtype=jnp.float32)

    # 1) Kernel path (forced, since this input is tiny): lane-dense reshape to
    #    (1, 2048), single full-extent block.
    y, loss = dummy_model_forward(x, use_pallas=True)
    y, loss = jax.block_until_ready((y, loss))
    ref_loss = jnp.sum(x.astype(jnp.float32))
    assert y.shape == x.shape and jnp.array_equal(y, x), "identity output mismatch"
    assert jnp.allclose(loss, ref_loss, rtol=1e-6, atol=1e-2), (loss, ref_loss)

    # 2) Default path for tiny inputs (plain-XLA fast path) must agree.
    _, loss_fast = dummy_model_forward(x)
    loss_fast = jax.block_until_ready(loss_fast)
    assert jnp.allclose(loss_fast, ref_loss, rtol=1e-6, atol=1e-2), (loss_fast, ref_loss)

    # 3) Exercise tiling / ragged last tile / two-partition path with padded
    #    grid steps (small block_bytes forces many row tiles).
    x_big = jax.random.normal(jax.random.PRNGKey(1), (97, 512),
                              dtype=jnp.float32)
    _, loss_big = dummy_model_forward(x_big, block_bytes=16 * 1024,
                                      num_partitions=2, use_pallas=True)
    loss_big = jax.block_until_ready(loss_big)
    ref_big = jnp.sum(x_big.astype(jnp.float32))
    assert jnp.allclose(loss_big, ref_big, rtol=1e-5, atol=0.5), (loss_big, ref_big)

    print("KERNEL_OK")
</pallas_src>

<mosaic_0001>
module attributes {stable_mosaic.version = 11 : i64} {
  func.func @kernel(%arg0: i32, %arg1: i32, %arg2: memref<1x2048xf32, #tpu.memory_space<vmem>>, %arg3: memref<1x1x1xf32, #tpu.memory_space<vmem>>, %arg4: memref<1x2048xf32, #tpu.memory_space<vmem>>) attributes {dimension_semantics = [#tpu.dimension_semantics<parallel>, #tpu.dimension_semantics<arbitrary>], iteration_bounds = array<i64: 1, 1>, scalar_prefetch = 0 : i64, scratch_operands = 1 : i64, tpu.core_type = #tpu.core_type<tc>, window_params = [{transform_indices = @transform_0, window_bounds = array<i64: 1, 2048>}, {transform_indices = @transform_1, window_bounds = array<i64: 1, 1, 1>}]} {
    %c0_i32 = arith.constant 0 : i32
    %0 = arith.cmpi eq, %arg1, %c0_i32 : i32
    %1 = arith.extui %0 : i1 to i32
    %c0_i32_0 = arith.constant 0 : i32
    %2 = arith.cmpi ne, %1, %c0_i32_0 : i32
    scf.if %2 {
      %cst_8 = arith.constant 0.000000e+00 : f32
      %12 = vector.broadcast %cst_8 : f32 to vector<1x2048xf32>
      %c0_9 = arith.constant 0 : index
      %c0_10 = arith.constant 0 : index
      %13 = vector.load %arg4[%c0_9, %c0_10] : memref<1x2048xf32, #tpu.memory_space<vmem>>, vector<1x2048xf32>
      tpu.vector_store %arg4[%c0_9, %c0_10], %12 {strides = array<i32>} : memref<1x2048xf32, #tpu.memory_space<vmem>>, vector<1x2048xf32>,
    } else {
    }
    %c0 = arith.constant 0 : index
    %c0_1 = arith.constant 0 : index
    %3 = vector.load %arg4[%c0, %c0_1] : memref<1x2048xf32, #tpu.memory_space<vmem>>, vector<1x2048xf32>
    %c0_2 = arith.constant 0 : index
    %c0_3 = arith.constant 0 : index
    %4 = vector.load %arg2[%c0_2, %c0_3] : memref<1x2048xf32, #tpu.memory_space<vmem>>, vector<1x2048xf32>
    %cst = arith.constant dense<0.000000e+00> : vector<2048xf32>
    %5 = vector.multi_reduction <add>, %4, %cst [0] : vector<1x2048xf32> to vector<2048xf32>
    %6 = vector.shape_cast %5 : vector<2048xf32> to vector<1x2048xf32>
    %7 = arith.addf %3, %6 : vector<1x2048xf32>
    %c0_4 = arith.constant 0 : index
    %c0_5 = arith.constant 0 : index
    %8 = vector.load %arg4[%c0_4, %c0_5] : memref<1x2048xf32, #tpu.memory_space<vmem>>, vector<1x2048xf32>
    tpu.vector_store %arg4[%c0_4, %c0_5], %7 {strides = array<i32>} : memref<1x2048xf32, #tpu.memory_space<vmem>>, vector<1x2048xf32>,
    %c0_i32_6 = arith.constant 0 : i32
    %9 = arith.cmpi eq, %arg1, %c0_i32_6 : i32
    %10 = arith.extui %9 : i1 to i32
    %c0_i32_7 = arith.constant 0 : i32
    %11 = arith.cmpi ne, %10, %c0_i32_7 : i32
    scf.if %11 {
      %c0_8 = arith.constant 0 : index
      %c0_9 = arith.constant 0 : index
      %12 = vector.load %arg4[%c0_8, %c0_9] : memref<1x2048xf32, #tpu.memory_space<vmem>>, vector<1x2048xf32>
      %13 = vector.shape_cast %12 : vector<1x2048xf32> to vector<1x1x2048xf32>
      %cst_10 = arith.constant dense<0.000000e+00> : vector<1xf32>
      %14 = vector.multi_reduction <add>, %13, %cst_10 [1, 2] : vector<1x1x2048xf32> to vector<1xf32>
      %15 = vector.shape_cast %14 : vector<1xf32> to vector<1x1x1xf32>
      %16 = vector.extract %15[0, 0, 0] : f32 from vector<1x1x1xf32>
      %17 = vector.broadcast %16 : f32 to vector<1x1x1xf32>
      %c0_11 = arith.constant 0 : index
      %c0_12 = arith.constant 0 : index
      %c0_13 = arith.constant 0 : index
      %18 = vector.load %arg3[%c0_11, %c0_12, %c0_13] : memref<1x1x1xf32, #tpu.memory_space<vmem>>, vector<1x1x1xf32>
      tpu.vector_store %arg3[%c0_11, %c0_12, %c0_13], %17 {strides = array<i32>} : memref<1x1x1xf32, #tpu.memory_space<vmem>>, vector<1x1x1xf32>,
    } else {
    }
    return
  }
  func.func @transform_0(%arg0: i32, %arg1: i32) -> (i32, i32) {
    %c1_i32 = arith.constant 1 : i32
    %0 = arith.muli %arg0, %c1_i32 : i32
    %1 = arith.addi %0, %arg1 : i32
    %c0_i32 = arith.constant 0 : i32
    %2 = arith.minsi %1, %c0_i32 : i32
    %c0_i32_0 = arith.constant 0 : i32
    %c0_i32_1 = arith.constant 0 : i32
    return %2, %c0_i32_0 : i32, i32
  }
  func.func @transform_1(%arg0: i32, %arg1: i32) -> (i32, i32, i32) {
    %c0_i32 = arith.constant 0 : i32
    %c0_i32_0 = arith.constant 0 : i32
    %c0_i32_1 = arith.constant 0 : i32
    return %arg0, %c0_i32, %c0_i32_0 : i32, i32, i32
  }
}

</mosaic_0001>

<bundles_post_ra>
// kernel: tpu_custom_call.1
= control target key start
LH: loop header
LB: loop body
LE: loop exit
PB: predicated region body
PF: predicated region fallthrough
CT: control target
= control target key end

     0   :  { %6 = vsyncpa [#allocation4], 0  ;;  %s298_s0 = inlined_call_operand.hbm [shape: f32[1,2048], index: 0, kind: input, shape index: {}]   ;;  %s299_s1 = inlined_call_operand.hbm [shape: f32[1,1,1], index: 1, kind: output, shape index: {}]  }
   0x1   :  { %7 = vsyncpa [#allocation5], 0  ;;  %s246_s6 = smov [#allocation3]   ;;  %s198_s10 = scalar_lea.hbm %s298_s0, 256 }
   0x2   :  { %s20_s7 = sshll.u32 %s246_s6, 4  ;;  %p199_p0 = scmp.ne.s32.totalorder %s298_s0, %s198_s10  ;;  %s21_s7 = int_to_ptr.vmem [resolvable:$true] %s20_s7 }
   0x3   :  { %p202_p1 = scmp.lt.u32.totalorder %s198_s10, %s298_s0 }
   0x5   :  { %p204_p2 = pnand %p202_p1, %p199_p0 }
   0x7   :  { %207 = shalt.err (!%p204_p2)
}
   0x8   :  { %s208_s15 = scalar_lea.vmem %s21_s7, 256  ;;  %p213_p4 = scmp.lt.s32.totalorder %s21_s7, %s21_s7 }
   0x9   :  { %p209_p3 = scmp.ne.s32.totalorder %s21_s7, %s208_s15  ;;  %p214_p5 = scmp.lt.s32.totalorder %s208_s15, %s208_s15 }
   0xb   :  { %p215_p6 = por %p214_p5, %p213_p4 }
   0xd   :  { %p216_p7 = pnand %p215_p6, %p209_p3 }
   0xf   :  { %219 = shalt.err (!%p216_p7)
}
  0x10   :  { %23 = dma.hbm_to_vmem [thread:$0]  %s298_s0, 256, %s21_s7, [#allocation4]  }
  0x11   :  { %242 = dma.done.wait [#allocation4], 256  }
  0x12   :  { %243 = vsyncadd [#allocation4], 4294967040  ;;  %v53_v0 = vlaneseq  ;;  %v38_v6 = vld [vmem:[#allocation3] sm:$0xff]  ;;  %vm133_vm0 = vcmask 1040384   ;;  %v39_v25 = vld [vmem:[#allocation3 + $0x8] sm:$0xff]  ;;  %s247_s0 = smov [#allocation6]  }
  0x13   :  { %s183_s18 = sshll.u32 %s247_s0, 4  ;;  %vm175_vm1 = vcmask 0   ;;  %s184_s18 = int_to_ptr.vmem [resolvable:$true] %s183_s18 }
  0x14   :  { %v54_v1 = vshrl.u32 %v53_v0, 7  ;;  %s220_s20 = scalar_lea.vmem %s184_s18, 16  ;;  %s224_s21 = scalar_lea.vmem %s184_s18, 32 }
  0x15   :  { %p221_p8 = scmp.ne.s32.totalorder %s184_s18, %s220_s20  ;;  %p225_p9 = scmp.lt.s32.totalorder %s184_s18, %s184_s18 }
  0x16   :  { %v55_v2 = vsub.s32 0, %v54_v1  ;;  %v59_v3 = vsub.s32 1, %v54_v1  ;;  %v63_v4 = vsub.s32 2, %v54_v1  ;;  %v67_v5 = vsub.s32 3, %v54_v1  ;;  %p226_p10 = scmp.lt.s32.totalorder %s224_s21, %s220_s20 }
  0x17   :  { %v71_v10 = vsub.s32 4, %v54_v1  ;;  %v75_v12 = vsub.s32 5, %v54_v1  ;;  %v79_v13 = vsub.s32 6, %v54_v1  ;;  %v83_v20 = vsub.s32 7, %v54_v1 }
  0x18   :  { %v56_v7 = vrot.slane %v38_v6, %v55_v2  ;;  %v60_v8 = vrot.slane %v38_v6, %v59_v3  ;;  %v64_v9 = vrot.slane %v38_v6, %v63_v4  ;;  %v68_v11 = vrot.slane %v38_v6, %v67_v5  ;;  %p227_p11 = por %p226_p10, %p225_p9 }
  0x19   :  { %v72_v14 = vrot.slane %v38_v6, %v71_v10  ;;  %v76_v19 = vrot.slane %v38_v6, %v75_v12  ;;  %v80_v23 = vrot.slane %v38_v6, %v79_v13  ;;  %v84_v27 = vrot.slane %v38_v6, %v83_v20 }
  0x1a   :  { %v134_v15 = vsel %vm133_vm0, %v56_v7, 0.0  ;;  %v135_v16 = vsel %vm133_vm0, %v60_v8, 0.0  ;;  %v137_v17 = vsel %vm133_vm0, %v64_v9, 0.0  ;;  %v139_v21 = vsel %vm133_vm0, %v68_v11, 0.0  ;;  %p228_p12 = pnand %p227_p11, %p221_p8 }
  0x1b   :  { %v136_v18 = vadd.f32 %v135_v16, %v134_v15  ;;  %v141_v24 = vsel %vm133_vm0, %v72_v14, 0.0  ;;  %v143_v28 = vsel %vm133_vm0, %v76_v19, 0.0  ;;  %v88_v30 = vrot.slane %v39_v25, %v55_v2 }
  0x1c   :  { %v145_v31 = vsel %vm133_vm0, %v80_v23, 0.0  ;;  %v92_v33 = vrot.slane %v39_v25, %v59_v3  ;;  %v147_v34 = vsel %vm133_vm0, %v84_v27, 0.0  ;;  %v96_v36 = vrot.slane %v39_v25, %v63_v4 }
  0x1d   :  { %v138_v22 = vadd.f32 %v137_v17, %v136_v18  ;;  %v149_v37 = vsel %vm133_vm0, %v88_v30, 0.0  ;;  %v100_v39 = vrot.slane %v39_v25, %v67_v5  ;;  %v104_v42 = vrot.slane %v39_v25, %v71_v10 }
  0x1e   :  { %v151_v40 = vsel %vm133_vm0, %v92_v33, 0.0  ;;  %v153_v43 = vsel %vm133_vm0, %v96_v36, 0.0  ;;  %v108_v45 = vrot.slane %v39_v25, %v75_v12  ;;  %v112_v48 = vrot.slane %v39_v25, %v79_v13 }
  0x1f   :  { %v140_v26 = vadd.f32 %v139_v21, %v138_v22  ;;  %v155_v46 = vsel %vm133_vm0, %v100_v39, 0.0  ;;  %v157_v49 = vsel %vm133_vm0, %v104_v42, 0.0  ;;  %v116_v51 = vrot.slane %v39_v25, %v83_v20 }
  0x20   :  { %v159_v52 = vsel %vm133_vm0, %v108_v45, 0.0  ;;  %v161_v54 = vsel %vm133_vm0, %v112_v48, 0.0 }
  0x21   :  { %v142_v29 = vadd.f32 %v141_v24, %v140_v26  ;;  %v163_v56 = vsel %vm133_vm0, %v116_v51, 0.0 }
  0x23   :  { %v144_v32 = vadd.f32 %v143_v28, %v142_v29 }
  0x25   :  { %v146_v35 = vadd.f32 %v145_v31, %v144_v32 }
  0x27   :  { %v148_v38 = vadd.f32 %v147_v34, %v146_v35 }
  0x29   :  { %v150_v41 = vadd.f32 %v149_v37, %v148_v38 }
  0x2b   :  { %v152_v44 = vadd.f32 %v151_v40, %v150_v41 }
  0x2d   :  { %v154_v47 = vadd.f32 %v153_v43, %v152_v44 }
  0x2f   :  { %v156_v50 = vadd.f32 %v155_v46, %v154_v47 }
  0x31   :  { %v158_v53 = vadd.f32 %v157_v49, %v156_v50 }
  0x33   :  { %v160_v55 = vadd.f32 %v159_v52, %v158_v53 }
  0x35   :  { %v162_v57 = vadd.f32 %v161_v54, %v160_v55 }
  0x37   :  { %v164_v58 = vadd.f32 %v163_v56, %v162_v57 }
  0x39   :  { %165 = vadd.xlane.f32.xlu0 %v164_v58 }
  0xc6   :  { %v166_v59 = vpop.xlane.xlu0 %165 }
  0xc7   :  { %v167_v60 = vrot.slane %v166_v59, 4 }
  0xc9   :  { %v168_v61 = vadd.f32 %v167_v60, %v166_v59 }
  0xcb   :  { %v169_v62 = vrot.slane %v168_v61, 2 }
  0xcd   :  { %v170_v63 = vadd.f32 %v169_v62, %v168_v61 }
  0xcf   :  { %v171_v0 = vrot.slane %v170_v63, 1 }
  0xd1   :  { %v172_v1 = vadd.f32 %v171_v0, %v170_v63 }
  0xd3   :  { %194 = vpush %v172_v1 }
 0x104   :  { %s195_s19 = spop %194 }
 0x105   :  { %v174_v2 = vstv %s195_s19 }
 0x106   :  { %176 = vst.msk [vmem:[#allocation6] sm:$0x1] %vm175_vm1, %v174_v2 }
 0x107   :  { %231 = shalt.err (!%p228_p12)
}
 0x108   :  { %s232_s24 = scalar_lea.hbm %s299_s1, 16 }
 0x109   :  { %p233_p13 = scmp.ne.s32.totalorder %s299_s1, %s232_s24  ;;  %p236_p0 = scmp.lt.u32.totalorder %s232_s24, %s299_s1 }
 0x10b   :  { %p238_p1 = pnand %p236_p0, %p233_p13 }
 0x10d   :  { %241 = shalt.err (!%p238_p1)
}
 0x10e   :  { %186 = dma.vmem_to_hbm [thread:$0]  %s184_s18, 16, %s299_s1, [#allocation5]  }
 0x10f   :  { %244 = dma.done.wait [#allocation5], 16  }
 0x110   :  { %245 = vsyncadd [#allocation5], 4294967280 }
 0x111   :  { %190 = vsyncpa [#allocation4], 1 }
 0x112   :  { %191 = vsyncpa [#allocation5], 1 }

</bundles_post_ra>
